<compile_context>
chip_gen: v6e
topology: v6e:2x2x1
jax: 0.10.0
libtpu: 0.0.40
codegen_flags: <defaults>
</compile_context>

<pallas_src>
import jax
import jax.numpy as jnp
from jax.experimental import pallas as pl
from jax.experimental.pallas import tpu as pltpu

HIDDEN = 64          # logical hidden width (matches nn.Linear)
HIDDEN_PAD = 128     # padded to full lane width
NUM_CLASSES = 10     # logical output width
CLS_PAD = 16         # classes padded to 2 f32 sublane-tiles
NEG_LARGE = -1e30    # baked into padded fc4 bias rows -> exp() underflows to 0


def _round_up(n, m):
    return ((n + m - 1) // m) * m


def _mlp_kernel(x_ref, w1_ref, b1_ref, w2_ref, b2_ref,
                w3_ref, b3_ref, w4t_ref, b4t_ref, o_ref):
    # bf16 operands on the MXU, f32 accumulation / bias / ReLU / log_softmax.
    x = x_ref[...].astype(jnp.bfloat16)     # cast in-kernel (no wrapper pass)

    h = jnp.dot(x, w1_ref[...], preferred_element_type=jnp.float32)
    h = jnp.maximum(h + b1_ref[...], 0.0).astype(jnp.bfloat16)

    h = jnp.dot(h, w2_ref[...], preferred_element_type=jnp.float32)
    h = jnp.maximum(h + b2_ref[...], 0.0).astype(jnp.bfloat16)

    h = jnp.dot(h, w3_ref[...], preferred_element_type=jnp.float32)
    h = jnp.maximum(h + b3_ref[...], 0.0).astype(jnp.bfloat16)

    # Transposed final layer: (16,128) contracted with (TB,128) over hidden
    # -> logits_t (16, TB): classes on sublanes, batch on lanes.  This makes
    # the output store lane-dense and 8x smaller than a padded 128-wide tile.
    logits_t = jnp.einsum('ch,bh->cb', w4t_ref[...], h,
                          preferred_element_type=jnp.float32)
    logits_t = logits_t + b4t_ref[...]       # padded class rows carry -1e30

    # Numerically stable log_softmax over the class (sublane) axis; padded
    # class rows contribute exp(-1e30 - m) == 0 to the normalizer.
    m = jnp.max(logits_t, axis=0, keepdims=True)
    shifted = logits_t - m
    lse = jnp.log(jnp.sum(jnp.exp(shifted), axis=0, keepdims=True))
    o_ref[...] = (shifted - lse).astype(o_ref.dtype)


def _pick_tiling(batch, tile_batch):
    """Choose (TB, grid) so that blocks satisfy TPU layout rules and the grid
    has >= 2 steps whenever the batch is large enough (v7x megacore)."""
    b16 = _round_up(batch, 16)
    if b16 < 512:
        tb = b16                               # single tile; TB == padded B
    else:
        # multiple of 256 (lane-dense output tile) and at least 2 grid steps
        tb = min(_round_up(tile_batch, 256),
                 _round_up(-(-b16 // 2), 256))
        tb = max(tb, 256)
    grid_b = -(-batch // tb)                   # ceil-div; ragged last block OK
    return tb, grid_b


def net_forward(x, params, *, tile_batch=2048):
    """x: (batch, input_size) f32. params: padded bf16/f32 weights."""
    B, F = x.shape
    w1, b1 = params["w1"], params["b1"]
    w2, b2 = params["w2"], params["b2"]
    w3, b3 = params["w3"], params["b3"]
    w4t, b4t = params["w4t"], params["b4t"]

    TB, grid_b = _pick_tiling(B, tile_batch)
    B_pad = TB * grid_b

    def resident(arr):
        # full-array block, same block every grid step -> stays in VMEM
        return pl.BlockSpec(tuple(arr.shape), lambda i: (0, 0))

    in_specs = [
        pl.BlockSpec((TB, F), lambda i: (i, 0)),      # ragged last block OK
        resident(w1), resident(b1),
        resident(w2), resident(b2),
        resident(w3), resident(b3),
        resident(w4t), resident(b4t),
    ]
    # transposed output: classes (16, sublanes) x batch (lanes)
    out_specs = pl.BlockSpec((CLS_PAD, TB), lambda i: (0, i))
    out_shape = jax.ShapeDtypeStruct((CLS_PAD, B_pad), jnp.float32)

    weight_bytes = sum(int(p.size) * p.dtype.itemsize for p in params.values())
    cost = pl.CostEstimate(
        flops=2 * B * (F * HIDDEN + 2 * HIDDEN * HIDDEN + HIDDEN * NUM_CLASSES),
        transcendentals=B * (NUM_CLASSES + 1),
        bytes_accessed=int(x.size) * 4 + CLS_PAD * B_pad * 4 + weight_bytes,
    )

    out_t = pl.pallas_call(
        _mlp_kernel,
        grid=(grid_b,),
        in_specs=in_specs,
        out_specs=out_specs,
        out_shape=out_shape,
        compiler_params=pltpu.CompilerParams(
            dimension_semantics=("parallel",),   # megacore batch split on v7x
        ),
        cost_estimate=cost,
    )(x, w1, b1, w2, b2, w3, b3, w4t, b4t)

    # drop padded class rows / padded batch lanes and restore (B, 10) layout
    return out_t[:NUM_CLASSES, :B].T


def init_params(key, input_size):
    """nn.Linear-style init. fc1-fc3 weights stored (in, out), fc4 stored
    transposed (out, in) = PyTorch-native layout. Weights are bf16 (stored
    once, no per-call casts), biases f32; padded fc4 bias rows are -1e30."""
    ks = jax.random.split(key, 8)

    def linear(kw, kb, fan_in, fan_out):
        bound = 1.0 / jnp.sqrt(fan_in)
        w = jax.random.uniform(kw, (fan_in, fan_out), jnp.float32, -bound, bound)
        b = jax.random.uniform(kb, (fan_out,), jnp.float32, -bound, bound)
        return w, b

    w1, b1 = linear(ks[0], ks[1], input_size, HIDDEN)
    w2, b2 = linear(ks[2], ks[3], HIDDEN, HIDDEN)
    w3, b3 = linear(ks[4], ks[5], HIDDEN, HIDDEN)
    w4, b4 = linear(ks[6], ks[7], HIDDEN, NUM_CLASSES)

    def pad_w(w, rows, cols):
        z = jnp.zeros((rows, cols), jnp.float32)
        return z.at[:w.shape[0], :w.shape[1]].set(w)

    def pad_b(b, cols):
        return jnp.zeros((1, cols), jnp.float32).at[0, :b.shape[0]].set(b)

    return dict(
        w1=pad_w(w1, input_size, HIDDEN_PAD).astype(jnp.bfloat16),
        b1=pad_b(b1, HIDDEN_PAD),
        w2=pad_w(w2, HIDDEN_PAD, HIDDEN_PAD).astype(jnp.bfloat16),
        b2=pad_b(b2, HIDDEN_PAD),
        w3=pad_w(w3, HIDDEN_PAD, HIDDEN_PAD).astype(jnp.bfloat16),
        b3=pad_b(b3, HIDDEN_PAD),
        w4t=pad_w(w4.T, CLS_PAD, HIDDEN_PAD).astype(jnp.bfloat16),  # (out, in)
        b4t=jnp.full((CLS_PAD, 1), NEG_LARGE,
                     jnp.float32).at[:NUM_CLASSES, 0].set(b4),
    )


def _reference_forward(x, params):
    """Pure-JAX f32 reference using the same (bf16-rounded) weights."""
    f32 = lambda a: a.astype(jnp.float32)
    h = jnp.maximum(x @ f32(params["w1"]) + params["b1"], 0.0)
    h = jnp.maximum(h @ f32(params["w2"]) + params["b2"], 0.0)
    h = jnp.maximum(h @ f32(params["w3"]) + params["b3"], 0.0)
    logits = h @ f32(params["w4t"]).T + params["b4t"][:, 0]
    logits = logits[:, :NUM_CLASSES]
    return jax.nn.log_softmax(logits, axis=-1)


def _check(batch, input_size, key):
    k_x, k_p = jax.random.split(key)
    x = jax.random.normal(k_x, (batch, input_size), jnp.float32)
    params = init_params(k_p, input_size)

    out = jax.block_until_ready(net_forward(x, params))
    assert out.shape == (batch, NUM_CLASSES)

    # log_softmax rows must exp-sum to ~1 (normalization is done in f32)
    row_sums = jnp.exp(out).sum(axis=1)
    assert bool(jnp.allclose(row_sums, 1.0, atol=1e-4))

    # loose comparison vs f32 reference (kernel uses bf16 matmul operands)
    ref = _reference_forward(x, params)
    assert bool(jnp.allclose(out, ref, atol=5e-2, rtol=5e-2))


if __name__ == "__main__":
    key = jax.random.PRNGKey(0)
    k0, k1 = jax.random.split(key)

    # small shape consistent with the module (launch-overhead dominated; the
    # gridded / compact-output design pays off at large batch)
    _check(batch=8, input_size=32, key=k0)
    # exercises multi-step grid + ragged last block (grid=2, B_pad=1024)
    _check(batch=600, input_size=32, key=k1)

    print("KERNEL_OK")
</pallas_src>

<mosaic_0001>
module attributes {stable_mosaic.version = 11 : i64} {
  func.func @_mlp_kernel(%arg0: i32, %arg1: memref<16x32xf32, #tpu.memory_space<vmem>>, %arg2: memref<32x128xbf16, #tpu.memory_space<vmem>>, %arg3: memref<1x128xf32, #tpu.memory_space<vmem>>, %arg4: memref<128x128xbf16, #tpu.memory_space<vmem>>, %arg5: memref<1x128xf32, #tpu.memory_space<vmem>>, %arg6: memref<128x128xbf16, #tpu.memory_space<vmem>>, %arg7: memref<1x128xf32, #tpu.memory_space<vmem>>, %arg8: memref<16x128xbf16, #tpu.memory_space<vmem>>, %arg9: memref<16x1xf32, #tpu.memory_space<vmem>>, %arg10: memref<16x16xf32, #tpu.memory_space<vmem>>) attributes {dimension_semantics = [#tpu.dimension_semantics<parallel>], iteration_bounds = array<i64: 1>, scalar_prefetch = 0 : i64, scratch_operands = 0 : i64, tpu.core_type = #tpu.core_type<tc>, window_params = [{transform_indices = @transform_0, window_bounds = array<i64: 16, 32>}, {pipeline_mode = #tpu.pipeline_mode<synchronous>, transform_indices = @transform_1, window_bounds = array<i64: 32, 128>}, {pipeline_mode = #tpu.pipeline_mode<synchronous>, transform_indices = @transform_2, window_bounds = array<i64: 1, 128>}, {pipeline_mode = #tpu.pipeline_mode<synchronous>, transform_indices = @transform_3, window_bounds = array<i64: 128, 128>}, {pipeline_mode = #tpu.pipeline_mode<synchronous>, transform_indices = @transform_4, window_bounds = array<i64: 1, 128>}, {pipeline_mode = #tpu.pipeline_mode<synchronous>, transform_indices = @transform_5, window_bounds = array<i64: 128, 128>}, {pipeline_mode = #tpu.pipeline_mode<synchronous>, transform_indices = @transform_6, window_bounds = array<i64: 1, 128>}, {pipeline_mode = #tpu.pipeline_mode<synchronous>, transform_indices = @transform_7, window_bounds = array<i64: 16, 128>}, {pipeline_mode = #tpu.pipeline_mode<synchronous>, transform_indices = @transform_8, window_bounds = array<i64: 16, 1>}, {transform_indices = @transform_9, window_bounds = array<i64: 16, 16>}]} {
    %c0 = arith.constant 0 : index
    %c0_0 = arith.constant 0 : index
    %0 = vector.load %arg1[%c0, %c0_0] : memref<16x32xf32, #tpu.memory_space<vmem>>, vector<16x32xf32>
    %1 = arith.truncf %0 : vector<16x32xf32> to vector<16x32xbf16>
    %c0_1 = arith.constant 0 : index
    %c0_2 = arith.constant 0 : index
    %2 = vector.load %arg2[%c0_1, %c0_2] : memref<32x128xbf16, #tpu.memory_space<vmem>>, vector<32x128xbf16>
    %cst = arith.constant dense<0.000000e+00> : vector<16x128xf32>
    %3 = tpu.matmul %1, %2, %cst {dimension_numbers = #tpu.dot_dimension_numbers<[1], [0], [0], [1], [0, 0, 1, 1], [], []>} : vector<16x32xbf16>, vector<32x128xbf16>, vector<16x128xf32> -> vector<16x128xf32>
    %c0_3 = arith.constant 0 : index
    %c0_4 = arith.constant 0 : index
    %4 = vector.load %arg3[%c0_3, %c0_4] : memref<1x128xf32, #tpu.memory_space<vmem>>, vector<1x128xf32>
    %5 = vector.broadcast %4 : vector<1x128xf32> to vector<16x128xf32>
    %6 = arith.addf %3, %5 : vector<16x128xf32>
    %cst_5 = arith.constant 0.000000e+00 : f32
    %7 = vector.broadcast %cst_5 : f32 to vector<16x128xf32>
    %8 = arith.maximumf %6, %7 : vector<16x128xf32>
    %9 = arith.truncf %8 : vector<16x128xf32> to vector<16x128xbf16>
    %c0_6 = arith.constant 0 : index
    %c0_7 = arith.constant 0 : index
    %10 = vector.load %arg4[%c0_6, %c0_7] : memref<128x128xbf16, #tpu.memory_space<vmem>>, vector<128x128xbf16>
    %cst_8 = arith.constant dense<0.000000e+00> : vector<16x128xf32>
    %11 = tpu.matmul %9, %10, %cst_8 {dimension_numbers = #tpu.dot_dimension_numbers<[1], [0], [0], [1], [0, 0, 1, 1], [], []>} : vector<16x128xbf16>, vector<128x128xbf16>, vector<16x128xf32> -> vector<16x128xf32>
    %c0_9 = arith.constant 0 : index
    %c0_10 = arith.constant 0 : index
    %12 = vector.load %arg5[%c0_9, %c0_10] : memref<1x128xf32, #tpu.memory_space<vmem>>, vector<1x128xf32>
    %13 = vector.broadcast %12 : vector<1x128xf32> to vector<16x128xf32>
    %14 = arith.addf %11, %13 : vector<16x128xf32>
    %cst_11 = arith.constant 0.000000e+00 : f32
    %15 = vector.broadcast %cst_11 : f32 to vector<16x128xf32>
    %16 = arith.maximumf %14, %15 : vector<16x128xf32>
    %17 = arith.truncf %16 : vector<16x128xf32> to vector<16x128xbf16>
    %c0_12 = arith.constant 0 : index
    %c0_13 = arith.constant 0 : index
    %18 = vector.load %arg6[%c0_12, %c0_13] : memref<128x128xbf16, #tpu.memory_space<vmem>>, vector<128x128xbf16>
    %cst_14 = arith.constant dense<0.000000e+00> : vector<16x128xf32>
    %19 = tpu.matmul %17, %18, %cst_14 {dimension_numbers = #tpu.dot_dimension_numbers<[1], [0], [0], [1], [0, 0, 1, 1], [], []>} : vector<16x128xbf16>, vector<128x128xbf16>, vector<16x128xf32> -> vector<16x128xf32>
    %c0_15 = arith.constant 0 : index
    %c0_16 = arith.constant 0 : index
    %20 = vector.load %arg7[%c0_15, %c0_16] : memref<1x128xf32, #tpu.memory_space<vmem>>, vector<1x128xf32>
    %21 = vector.broadcast %20 : vector<1x128xf32> to vector<16x128xf32>
    %22 = arith.addf %19, %21 : vector<16x128xf32>
    %cst_17 = arith.constant 0.000000e+00 : f32
    %23 = vector.broadcast %cst_17 : f32 to vector<16x128xf32>
    %24 = arith.maximumf %22, %23 : vector<16x128xf32>
    %25 = arith.truncf %24 : vector<16x128xf32> to vector<16x128xbf16>
    %c0_18 = arith.constant 0 : index
    %c0_19 = arith.constant 0 : index
    %26 = vector.load %arg8[%c0_18, %c0_19] : memref<16x128xbf16, #tpu.memory_space<vmem>>, vector<16x128xbf16>
    "tpu.trace_start"() <{level = 10 : i32, message = "ch,bh->cb"}> : () -> ()
    %cst_20 = arith.constant dense<0.000000e+00> : vector<16x16xf32>
    %27 = tpu.matmul %26, %25, %cst_20 {dimension_numbers = #tpu.dot_dimension_numbers<[1], [1], [0], [0], [0, 0, 1, 0], [], []>} : vector<16x128xbf16>, vector<16x128xbf16>, vector<16x16xf32> -> vector<16x16xf32>
    "tpu.trace_stop"() : () -> ()
    %c0_21 = arith.constant 0 : index
    %c0_22 = arith.constant 0 : index
    %28 = vector.load %arg9[%c0_21, %c0_22] : memref<16x1xf32, #tpu.memory_space<vmem>>, vector<16x1xf32>
    %29 = vector.broadcast %28 : vector<16x1xf32> to vector<16x16xf32>
    %30 = arith.addf %27, %29 : vector<16x16xf32>
    %cst_23 = arith.constant dense<0xFF800000> : vector<16xf32>
    %31 = vector.multi_reduction <maximumf>, %30, %cst_23 [0] : vector<16x16xf32> to vector<16xf32>
    %32 = vector.shape_cast %31 : vector<16xf32> to vector<1x16xf32>
    %33 = vector.broadcast %32 : vector<1x16xf32> to vector<16x16xf32>
    %34 = arith.subf %30, %33 : vector<16x16xf32>
    %35 = math.exp %34 : vector<16x16xf32>
    %cst_24 = arith.constant dense<0.000000e+00> : vector<16xf32>
    %36 = vector.multi_reduction <add>, %35, %cst_24 [0] : vector<16x16xf32> to vector<16xf32>
    %37 = vector.shape_cast %36 : vector<16xf32> to vector<1x16xf32>
    %38 = math.log %37 : vector<1x16xf32>
    %39 = vector.broadcast %38 : vector<1x16xf32> to vector<16x16xf32>
    %40 = arith.subf %34, %39 : vector<16x16xf32>
    %c0_25 = arith.constant 0 : index
    %c0_26 = arith.constant 0 : index
    %41 = vector.load %arg10[%c0_25, %c0_26] : memref<16x16xf32, #tpu.memory_space<vmem>>, vector<16x16xf32>
    tpu.vector_store %arg10[%c0_25, %c0_26], %40 {strides = array<i32>} : memref<16x16xf32, #tpu.memory_space<vmem>>, vector<16x16xf32>,
    return
  }
  func.func @transform_0(%arg0: i32) -> (i32, i32) {
    %c0_i32 = arith.constant 0 : i32
    %c0_i32_0 = arith.constant 0 : i32
    return %arg0, %c0_i32 : i32, i32
  }
  func.func @transform_1(%arg0: i32) -> (i32, i32) {
    %c0_i32 = arith.constant 0 : i32
    %c0_i32_0 = arith.constant 0 : i32
    %c0_i32_1 = arith.constant 0 : i32
    return %c0_i32, %c0_i32_0 : i32, i32
  }
  func.func @transform_2(%arg0: i32) -> (i32, i32) {
    %c0_i32 = arith.constant 0 : i32
    %c0_i32_0 = arith.constant 0 : i32
    %c0_i32_1 = arith.constant 0 : i32
    return %c0_i32, %c0_i32_0 : i32, i32
  }
  func.func @transform_3(%arg0: i32) -> (i32, i32) {
    %c0_i32 = arith.constant 0 : i32
    %c0_i32_0 = arith.constant 0 : i32
    %c0_i32_1 = arith.constant 0 : i32
    return %c0_i32, %c0_i32_0 : i32, i32
  }
  func.func @transform_4(%arg0: i32) -> (i32, i32) {
    %c0_i32 = arith.constant 0 : i32
    %c0_i32_0 = arith.constant 0 : i32
    %c0_i32_1 = arith.constant 0 : i32
    return %c0_i32, %c0_i32_0 : i32, i32
  }
  func.func @transform_5(%arg0: i32) -> (i32, i32) {
    %c0_i32 = arith.constant 0 : i32
    %c0_i32_0 = arith.constant 0 : i32
    %c0_i32_1 = arith.constant 0 : i32
    return %c0_i32, %c0_i32_0 : i32, i32
  }
  func.func @transform_6(%arg0: i32) -> (i32, i32) {
    %c0_i32 = arith.constant 0 : i32
    %c0_i32_0 = arith.constant 0 : i32
    %c0_i32_1 = arith.constant 0 : i32
    return %c0_i32, %c0_i32_0 : i32, i32
  }
  func.func @transform_7(%arg0: i32) -> (i32, i32) {
    %c0_i32 = arith.constant 0 : i32
    %c0_i32_0 = arith.constant 0 : i32
    %c0_i32_1 = arith.constant 0 : i32
    return %c0_i32, %c0_i32_0 : i32, i32
  }
  func.func @transform_8(%arg0: i32) -> (i32, i32) {
    %c0_i32 = arith.constant 0 : i32
    %c0_i32_0 = arith.constant 0 : i32
    %c0_i32_1 = arith.constant 0 : i32
    return %c0_i32, %c0_i32_0 : i32, i32
  }
  func.func @transform_9(%arg0: i32) -> (i32, i32) {
    %c0_i32 = arith.constant 0 : i32
    %c0_i32_0 = arith.constant 0 : i32
    return %c0_i32, %arg0 : i32, i32
  }
}

</mosaic_0001>

<bundles_post_ra>
// kernel: tpu_custom_call.1
= control target key start
LH: loop header
LB: loop body
LE: loop exit
PB: predicated region body
PF: predicated region fallthrough
CT: control target
= control target key end

     0   :  { %14 = vsyncpa [#allocation3], 0  ;;  %s918_s0 = inlined_call_operand.hbm [shape: f32[8,32], index: 0, kind: input, shape index: {}]   ;;  %s919_s1 = inlined_call_operand.vmem [shape: bf16[32,128], index: 1, kind: input, shape index: {}]   ;;  %s920_s2 = inlined_call_operand.hbm [shape: f32[1,128], index: 2, kind: input, shape index: {}]   ;;  %s921_s3 = inlined_call_operand.hbm [shape: bf16[128,128], index: 3, kind: input, shape index: {}]   ;;  %s922_s4 = inlined_call_operand.hbm [shape: f32[1,128], index: 4, kind: input, shape index: {}]   ;;  %s923_s5 = inlined_call_operand.hbm [shape: bf16[128,128], index: 5, kind: input, shape index: {}]   ;;  %s924_s6 = inlined_call_operand.vmem [shape: f32[1,128], index: 6, kind: input, shape index: {}]   ;;  %s925_s7 = inlined_call_operand.vmem [shape: bf16[16,128], index: 7, kind: input, shape index: {}]   ;;  %s926_s8 = inlined_call_operand.vmem [shape: f32[16,1], index: 8, kind: input, shape index: {}]   ;;  %s927_s9 = inlined_call_operand.hbm [shape: f32[16,16], index: 9, kind: output, shape index: {}]  }
   0x1   :  { %15 = vsyncpa [#allocation6], 0 }
   0x2   :  { %16 = vsyncpa [#allocation9], 0 }
   0x3   :  { %17 = vsyncpa [#allocation4], 0 }
   0x4   :  { %22 = vsyncadd [#allocation3], 128  ;;  %s780_s30 = smov [#allocation5]   ;;  %s781_s11 = smov [#allocation8]  }
   0x5   :  { %s38_s10 = sshll.u32 %s780_s30, 4  ;;  %s60_s12 = sshll.u32 %s781_s11, 4  ;;  %s39_s10 = int_to_ptr.vmem [resolvable:$true] %s38_s10  ;;  %s61_s12 = int_to_ptr.vmem [resolvable:$true] %s60_s12 }
   0x6   :  { %s660_s13 = scalar_lea.vmem %s39_s10, 16  ;;  %s664_s14 = scalar_lea.vmem %s39_s10, 32 }
   0x7   :  { %p661_p0 = scmp.ne.s32.totalorder %s39_s10, %s660_s13  ;;  %p665_p1 = scmp.lt.s32.totalorder %s39_s10, %s39_s10 }
   0x8   :  { %p666_p2 = scmp.lt.s32.totalorder %s664_s14, %s660_s13 }
   0xa   :  { %p667_p3 = por %p666_p2, %p665_p1 }
   0xc   :  { %p668_p4 = pnand %p667_p3, %p661_p0 }
   0xe   :  { %671 = shalt.err (!%p668_p4)
}
   0xf   :  { %41 = dma.hbm_to_vmem [thread:$0]  %s920_s2, 16, %s39_s10, [#allocation6]  }
  0x10   :  { %s680_s17 = scalar_lea.vmem %s61_s12, 16  ;;  %s684_s18 = scalar_lea.vmem %s61_s12, 32 }
  0x11   :  { %p681_p5 = scmp.ne.s32.totalorder %s61_s12, %s680_s17  ;;  %p685_p6 = scmp.lt.s32.totalorder %s61_s12, %s61_s12 }
  0x12   :  { %p686_p7 = scmp.lt.s32.totalorder %s684_s18, %s680_s17 }
  0x14   :  { %p687_p8 = por %p686_p7, %p685_p6 }
  0x16   :  { %p688_p9 = pnand %p687_p8, %p681_p5 }
  0x18   :  { %691 = shalt.err (!%p688_p9)
}
  0x19   :  { %63 = dma.hbm_to_vmem [thread:$0]  %s922_s4, 16, %s61_s12, [#allocation9]  }
  0x1a   :  { %s782_s21 = smov [#allocation2]  }
  0x1b   :  { %s23_s22 = sshll.u32 %s782_s21, 4  ;;  %s24_s22 = int_to_ptr.vmem [resolvable:$true] %s23_s22 }
  0x1c   :  { %s700_s23 = scalar_lea.vmem %s24_s22, 128  ;;  %s704_s24 = scalar_lea.vmem %s24_s22, 256 }
  0x1d   :  { %p701_p10 = scmp.ne.s32.totalorder %s24_s22, %s700_s23  ;;  %p705_p11 = scmp.lt.s32.totalorder %s24_s22, %s24_s22 }
  0x1e   :  { %p706_p12 = scmp.lt.s32.totalorder %s704_s24, %s700_s23 }
  0x20   :  { %p707_p13 = por %p706_p12, %p705_p11 }
  0x22   :  { %p708_p0 = pnand %p707_p13, %p701_p10 }
  0x24   :  { %711 = shalt.err (!%p708_p0)
}
  0x25   :  { %s783_s2 = smov 128   ;;  %s784_s25 = smov 8  }
  0x26   :  { %29 = dma.hbm_to_vmem [thread:$0]  %s918_s0, 128, %s24_s22, [#allocation3], %s783_s2, %s783_s2, %s784_s25  }
  0x27   :  { %s785_s4 = smov [#allocation7]  }
  0x28   :  { %s47_s28 = sshll.u32 %s785_s4, 4  ;;  %s48_s28 = int_to_ptr.vmem [resolvable:$true] %s47_s28 }
  0x29   :  { %s720_s29 = scalar_lea.vmem %s48_s28, 1024  ;;  %p725_p2 = scmp.lt.s32.totalorder %s48_s28, %s48_s28 }
  0x2a   :  { %p721_p1 = scmp.ne.s32.totalorder %s48_s28, %s720_s29  ;;  %p726_p3 = scmp.lt.s32.totalorder %s720_s29, %s720_s29 }
  0x2c   :  { %p727_p4 = por %p726_p3, %p725_p2 }
  0x2e   :  { %p728_p5 = pnand %p727_p4, %p721_p1 }
  0x30   :  { %731 = shalt.err (!%p728_p5)
}
  0x31   :  { %s786_s30 = smov 64   ;;  %s787_s10 = smov 4  }
  0x32   :  { %53 = dma.hbm_to_vmem [thread:$0]  %s921_s3, 1024, %s48_s28, [#allocation6], %s786_s30, %s786_s30, %s787_s10  }
  0x33   :  { %s788_s13 = smov [#allocation10]  }
  0x34   :  { %s69_s14 = sshll.u32 %s788_s13, 4  ;;  %s70_s14 = int_to_ptr.vmem [resolvable:$true] %s69_s14 }
  0x35   :  { %s740_s0 = scalar_lea.vmem %s70_s14, 1024  ;;  %p745_p7 = scmp.lt.s32.totalorder %s70_s14, %s70_s14 }
  0x36   :  { %p741_p6 = scmp.ne.s32.totalorder %s70_s14, %s740_s0  ;;  %p746_p8 = scmp.lt.s32.totalorder %s740_s0, %s740_s0 }
  0x38   :  { %p747_p9 = por %p746_p8, %p745_p7 }
  0x3a   :  { %p748_p10 = pnand %p747_p9, %p741_p6 }
  0x3c   :  { %751 = shalt.err (!%p748_p10)
}
  0x3d   :  { %75 = dma.hbm_to_vmem [thread:$0]  %s923_s5, 1024, %s70_s14, [#allocation9], %s786_s30, %s786_s30, %s787_s10  }
  0x3e   :  { %772 = dma.done.wait [#allocation3], 256  }
  0x3f   :  { %773 = vsyncadd [#allocation3], 4294967040 }
  0x40   :  { %774 = dma.done.wait [#allocation6], 1040  }
  0x41   :  { %775 = vsyncadd [#allocation6], 4294966256 }
  0x42   :  { %776 = dma.done.wait [#allocation9], 1040  }
  0x43   :  { %777 = vsyncadd [#allocation9], 4294966256  ;;  %v789_v0 = vmov 0.0   ;;  %vm790_vm0 = vmmov 0   ;;  %v627_v1 = vld [vmem:[%s919_s1 + $0x8] sm:$0xff]   ;;  %v628_v2 = vld [vmem:[%s919_s1] sm:$0xff]  }
  0x44   :  { %559 = vmatprep.subr.bf16.mxu0 %v789_v0  ;;  %563 = vmatprep.mubr.msk.bf16.mxu0 %vm790_vm0, %v789_v0  ;;  %v98_v3 = vld [vmem:[#allocation2] sm:$0xff]  ;;  %v99_v4 = vld [vmem:[#allocation2 + $0x8] sm:$0xff]  ;;  %vm124_vm1 = vcmask 261120   ;;  %v632_v9 = vld [vmem:[#allocation7 + $0x20] sm:$0xff]   ;;  %v791_v43 = vmov 0   ;;  %vm463_vm2 = vcmask 130048  }
  0x45   :  { %567 = vmatprep.subr.bf16.mxu1 %v789_v0  ;;  %583 = vmatprep.mubr.msk.bf16.mxu1 %vm790_vm0, %v789_v0  ;;  %v629_v5 = vld [vmem:[#allocation7 + $0x38] sm:$0xff]   ;;  %v100_v6 = vpack.c.bf16 %v99_v4, %v98_v3  ;;  %v630_v7 = vld [vmem:[#allocation7 + $0x30] sm:$0xff]   ;;  %v631_v8 = vld [vmem:[#allocation7 + $0x28] sm:$0xff]  }
  0x46   :  { %560 = vmatpush3.bf16.msra.mxu0 %v627_v1  ;;  %568 = vmatpush3.bf16.msra.mxu1 %v629_v5  ;;  %v633_v10 = vld [vmem:[#allocation7 + $0x18] sm:$0xff]   ;;  %v634_v11 = vld [vmem:[#allocation7 + $0x10] sm:$0xff]   ;;  %v635_v12 = vld [vmem:[#allocation7 + $0x8] sm:$0xff]  }
  0x47   :  { %561 = vmatprep.subr.bf16.mxu0 %v789_v0  ;;  %569 = vmatprep.subr.bf16.mxu1 %v789_v0  ;;  %v636_v13 = vld [vmem:[#allocation7] sm:$0xff]   ;;  %v638_v15 = vld [vmem:[#allocation10 + $0x30] sm:$0xff]   ;;  %v639_v16 = vld [vmem:[#allocation10 + $0x28] sm:$0xff]  }
  0x48   :  { %v637_v14 = vld [vmem:[#allocation10 + $0x38] sm:$0xff]   ;;  %v640_v17 = vld [vmem:[#allocation10 + $0x20] sm:$0xff]   ;;  %v642_v29 = vld [vmem:[#allocation10 + $0x10] sm:$0xff]   ;;  %626 = vset.pattern.permute.xlu0 %v791_v43 }
  0x49   :  { %v641_v18 = vld [vmem:[#allocation10 + $0x18] sm:$0xff]   ;;  %v643_v30 = vld [vmem:[#allocation10 + $0x8] sm:$0xff]   ;;  %v644_v31 = vld [vmem:[#allocation10] sm:$0xff]  }
  0x4a   :  { %562 = vmatpush3.bf16.msra.mxu0 %v628_v2  ;;  %570 = vmatpush3.bf16.msra.mxu1 %v630_v7  ;;  %v513_v19 = vld [vmem:[#allocation5] ss:$0 sm:$0xff]  ;;  %v517_v32 = vld [vmem:[#allocation8] ss:$0 sm:$0xff]  ;;  %v404_v42 = vld [vmem:[%s926_s8] sm:$0xff] }
  0x4b   :  { %587 = vmatprep.subr.bf16.mxu0 %v789_v0  ;;  %571 = vmatprep.subr.bf16.mxu1 %v789_v0  ;;  %v405_v44 = vld [vmem:[%s926_s8 + $0x8] sm:$0xff]  ;;  %v526_v45 = vld [vmem:[%s924_s6] ss:$0 sm:$0xff]  ;;  %s792_s6 = smov [#allocation11]  }
  0x4c   :  { %408 = vperm.xlu0 %626, %v404_v42   ;;  %v645_v55 = vld [vmem:[%s925_s7] sm:$0xff]   ;;  %s499_s7 = sshll.u32 %s792_s6, 4  ;;  %s500_s7 = int_to_ptr.vmem [resolvable:$true] %s499_s7 }
  0x4d   :  { %564 = vmatmul.mubr.msk.bf16.vlgmr.msra.gmra.mxu0 %vm124_vm1, %v100_v6  ;;  %s752_s8 = scalar_lea.vmem %s500_s7, 256  ;;  %p757_p12 = scmp.lt.s32.totalorder %s500_s7, %s500_s7 }
  0x4e   :  { %603 = vmatprep.mubr.msk.bf16.mxu0 %vm790_vm0, %v789_v0  ;;  %572 = vmatpush3.bf16.msra.mxu1 %v631_v8  ;;  %p753_p11 = scmp.ne.s32.totalorder %s500_s7, %s752_s8  ;;  %p758_p13 = scmp.lt.s32.totalorder %s752_s8, %s752_s8 }
  0x4f   :  { %573 = vmatprep.subr.bf16.mxu1 %v789_v0  ;;  %588 = vmatpush3.bf16.msra.mxu0 %v637_v14 }
  0x50   :  { %589 = vmatprep.subr.bf16.mxu0 %v789_v0  ;;  %413 = vperm.xlu0 %626, %v405_v44   ;;  %p759_p0 = por %p758_p13, %p757_p12 }
  0x52   :  { %574 = vmatpush3.bf16.msra.mxu1 %v632_v9  ;;  %p760_p1 = pnand %p759_p0, %p753_p11 }
  0x53   :  { %575 = vmatprep.subr.bf16.mxu1 %v789_v0  ;;  %590 = vmatpush3.bf16.msra.mxu0 %v638_v15 }
  0x54   :  { %591 = vmatprep.subr.bf16.mxu0 %v789_v0 }
  0x56   :  { %576 = vmatpush3.bf16.msra.mxu1 %v633_v10 }
  0x57   :  { %577 = vmatprep.subr.bf16.mxu1 %v789_v0  ;;  %592 = vmatpush3.bf16.msra.mxu0 %v639_v16 }
  0x58   :  { %593 = vmatprep.subr.bf16.mxu0 %v789_v0 }
  0x5a   :  { %578 = vmatpush3.bf16.msra.mxu1 %v634_v11 }
  0x5b   :  { %579 = vmatprep.subr.bf16.mxu1 %v789_v0  ;;  %594 = vmatpush3.bf16.msra.mxu0 %v640_v17 }
  0x5c   :  { %595 = vmatprep.subr.bf16.mxu0 %v789_v0 }
  0x5e   :  { %580 = vmatpush3.bf16.msra.mxu1 %v635_v12 }
  0x5f   :  { %581 = vmatprep.subr.bf16.mxu1 %v789_v0  ;;  %596 = vmatpush3.bf16.msra.mxu0 %v641_v18 }
  0x60   :  { %597 = vmatprep.subr.bf16.mxu0 %v789_v0 }
  0x62   :  { %582 = vmatpush3.bf16.msra.mxu1 %v636_v13 }
  0x63   :  { %607 = vmatprep.subr.bf16.mxu1 %v789_v0  ;;  %598 = vmatpush3.bf16.msra.mxu0 %v642_v29 }
  0x64   :  { %599 = vmatprep.subr.bf16.mxu0 %v789_v0 }
  0x67   :  { %600 = vmatpush3.bf16.msra.mxu0 %v643_v30 }
  0x68   :  { %601 = vmatprep.subr.bf16.mxu0 %v789_v0 }
  0x6b   :  { %602 = vmatpush3.bf16.msra.mxu0 %v644_v31 }
  0xc7   :  { %v409_v56 = vpop.permute.xlu0 %408 }
  0xcb   :  { %v414_v60 = vpop.permute.xlu0 %413 }
 0x10d   :  { %v162_v20 = vpop.f32.mrf.mxu0 }
 0x10e   :  { %v163_v22 = vadd.f32 %v513_v19, %v162_v20 }
 0x10f   :  { %v565_v21 = vpop.f32.mrf.mxu0 }
 0x110   :  { %v169_v26 = vmax.f32 %v163_v22, 0.0 }
 0x111   :  { %v165_v23 = vpop.f32.mrf.mxu0 }
 0x112   :  { %v166_v24 = vadd.f32 %v513_v19, %v165_v23 }
 0x113   :  { %v566_v25 = vpop.f32.mrf.mxu0 }
 0x114   :  { %v170_v27 = vmax.f32 %v166_v24, 0.0 }
 0x116   :  { %v171_v28 = vpack.c.bf16 %v170_v27, %v169_v26 }
 0x118   :  { %584 = vmatmul.mubr.bf16.vlgmr.msra.gmra.mxu1 %v171_v28 }
 0x119   :  { %609 = vmatprep.mubr.msk.bf16.mxu1 %vm790_vm0, %v789_v0 }
 0x1d8   :  { %v277_v33 = vpop.f32.mrf.mxu1 }
 0x1d9   :  { %v278_v35 = vadd.f32 %v517_v32, %v277_v33 }
 0x1da   :  { %v585_v34 = vpop.f32.mrf.mxu1 }
 0x1db   :  { %v284_v39 = vmax.f32 %v278_v35, 0.0 }
 0x1dc   :  { %v280_v36 = vpop.f32.mrf.mxu1 }
 0x1dd   :  { %v281_v37 = vadd.f32 %v517_v32, %v280_v36 }
 0x1de   :  { %v586_v38 = vpop.f32.mrf.mxu1 }
 0x1df   :  { %v285_v40 = vmax.f32 %v281_v37, 0.0 }
 0x1e1   :  { %v286_v41 = vpack.c.bf16 %v285_v40, %v284_v39 }
 0x1e3   :  { %604 = vmatmul.mubr.bf16.vlgmr.msra.gmra.mxu0 %v286_v41 }
 0x2a3   :  { %v392_v46 = vpop.f32.mrf.mxu0 }
 0x2a4   :  { %v393_v48 = vadd.f32 %v526_v45, %v392_v46 }
 0x2a5   :  { %v605_v47 = vpop.f32.mrf.mxu0 }
 0x2a6   :  { %v399_v52 = vmax.f32 %v393_v48, 0.0 }
 0x2a7   :  { %v395_v49 = vpop.f32.mrf.mxu0 }
 0x2a8   :  { %v396_v50 = vadd.f32 %v526_v45, %v395_v49 }
 0x2a9   :  { %v606_v51 = vpop.f32.mrf.mxu0 }
 0x2aa   :  { %v400_v53 = vmax.f32 %v396_v50, 0.0 }
 0x2ac   :  { %v401_v54 = vpack.c.bf16 %v400_v53, %v399_v52 }
 0x2ae   :  { %608 = vmatpush3.bf16.xpose.msra.mxu1 %v401_v54 }
 0x2b5   :  { %610 = vmatmul.mubr.bf16.vlgmr.msra.gmra.mxu1 %v645_v55 }
 0x375   :  { %v456_v57 = vpop.f32.mrf.mxu1 }
 0x376   :  { %v457_v59 = vadd.f32 %v456_v57, %v409_v56 }
 0x377   :  { %v611_v58 = vpop.f32.mrf.mxu1 }
 0x378   :  { %v464_v0 = vsel %vm463_vm2, %v457_v59, -inf }
 0x379   :  { %v459_v61 = vpop.f32.mrf.mxu1 }
 0x37a   :  { %v460_v62 = vadd.f32 %v459_v61, %v414_v60 }
 0x37b   :  { %v612_v63 = vpop.f32.mrf.mxu1 }
 0x37c   :  { %v465_v1 = vsel %vm463_vm2, %v460_v62, -inf }
 0x37d   :  { %v466_v2 = vmax.f32 %v464_v0, %v465_v1 }
 0x37f   :  { %v467_v3 = vrot.slane %v466_v2, 4 }
 0x381   :  { %v468_v4 = vmax.f32 %v466_v2, %v467_v3 }
 0x383   :  { %v469_v5 = vrot.slane %v468_v4, 2 }
 0x385   :  { %v470_v6 = vmax.f32 %v468_v4, %v469_v5 }
 0x387   :  { %v471_v7 = vrot.slane %v470_v6, 1 }
 0x389   :  { %v472_v8 = vmax.f32 %v470_v6, %v471_v7 }
 0x38b   :  { %v473_v9 = vsub.f32 %v457_v59, %v472_v8  ;;  %v474_v10 = vsub.f32 %v460_v62, %v472_v8 }
 0x38d   :  { %v475_v11 = vmul.f32 1.442695, %v473_v9  ;;  %v477_v12 = vmul.f32 1.442695, %v474_v10 }
 0x38f   :  { %646 = vpow2.f32 %v475_v11 }
 0x390   :  { %648 = vpow2.f32 %v477_v12 }
 0x39c   :  { %v647_v13 = vpop.eup %646 }
 0x39d   :  { %v649_v14 = vpop.eup %648  ;;  %v479_v15 = vsel %vm463_vm2, %v647_v13, 0.0 }
 0x39e   :  { %v480_v16 = vsel %vm463_vm2, %v649_v14, 0.0 }
 0x39f   :  { %v481_v17 = vadd.f32 %v480_v16, %v479_v15 }
 0x3a1   :  { %v482_v18 = vrot.slane %v481_v17, 4 }
 0x3a3   :  { %v483_v19 = vadd.f32 %v482_v18, %v481_v17 }
 0x3a5   :  { %v484_v20 = vrot.slane %v483_v19, 2 }
 0x3a7   :  { %v485_v21 = vadd.f32 %v484_v20, %v483_v19 }
 0x3a9   :  { %v486_v22 = vrot.slane %v485_v21, 1 }
 0x3ab   :  { %v487_v23 = vadd.f32 %v486_v22, %v485_v21 }
 0x3ad   :  { %650 = vlog2.f32 %v487_v23 }
 0x3ba   :  { %v651_v24 = vpop.eup %650 }
 0x3bb   :  { %v489_v25 = vmul.f32 0.6931472, %v651_v24 }
 0x3bd   :  { %v491_v26 = vsub.f32 %v474_v10, %v489_v25  ;;  %v490_v27 = vsub.f32 %v473_v9, %v489_v25 }
 0x3bf   :  { %493 = vst.msk [vmem:[#allocation11 + $0x8] sm:$0xff] %vm463_vm2, %v491_v26  ;;  %492 = vst.msk [vmem:[#allocation11] sm:$0xff] %vm463_vm2, %v490_v27 }
 0x3c0   :  { %763 = shalt.err (!%p760_p1)
}
 0x3c1   :  { %505 = dma.vmem_to_hbm [thread:$0]  %s500_s7, 256, %s927_s9, [#allocation4], %s783_s2, %s783_s2, %s784_s25  }
 0x3c2   :  { %778 = dma.done.wait [#allocation4], 256  }
 0x3c3   :  { %779 = vsyncadd [#allocation4], 4294967040 }
 0x3c4   :  { %509 = vsyncpa [#allocation3], 1 }
 0x3c5   :  { %510 = vsyncpa [#allocation6], 1 }
 0x3c6   :  { %511 = vsyncpa [#allocation9], 1 }
 0x3c7   :  { %512 = vsyncpa [#allocation4], 1 }

</bundles_post_ra>
